<compile_context>
chip_gen: v5e
topology: v5e:2x2
jax: 0.10.0
libtpu: 0.0.40
codegen_flags: <defaults>
</compile_context>

<pallas_src>
import functools

import jax
import jax.numpy as jnp
import numpy as np
from jax.experimental import pallas as pl
from jax.experimental.pallas import tpu as pltpu

OUT_DIM = {2: 39, 4: 35, 6: 31}
OUT_DIM_108 = {4: 47}
OUT_DIM_64 = {2: 29, 4: 25, 6: 21}

_CONV_TM = 512                      # target conv GEMM rows per grid step
_PROJ_TK = 8192                     # upper bound on projector K tile
_PROJ_VMEM_BUDGET = 12 * 1024 * 1024  # budget for double-buffered projector tiles


def _round_up(x, m):
    return ((x + m - 1) // m) * m


# ---------------------------------------------------------------------------
# Kernel 1: conv-as-GEMM  (relu( patches @ W + b )), lane-dense output
# ---------------------------------------------------------------------------
def _conv_gemm_kernel(p_ref, w_ref, b_ref, o_ref):
    y = jnp.dot(p_ref[...], w_ref[...], preferred_element_type=jnp.float32)
    o_ref[...] = jnp.maximum(y + b_ref[...], 0.0)          # fused bias + ReLU


def _prep_conv_weights(w_oihw, bias, G):
    """(Cout,Cin,kh,kw) -> block-diagonal (G*K, G*Cout) GEMM weight + tiled bias."""
    Cout, Cin, kh, kw = w_oihw.shape
    K = kh * kw * Cin
    # (kh, kw, cin, cout): matches the im2col inner (kh, kw, cin) ordering.
    w_mat = jnp.transpose(w_oihw, (2, 3, 1, 0)).reshape(K, Cout)
    w_g = jnp.kron(jnp.eye(G, dtype=w_mat.dtype), w_mat)    # block-diag, (G*K, G*Cout)
    b_g = jnp.tile(bias.reshape(1, Cout), (1, G))            # (1, G*Cout)
    return w_g, b_g


def conv2d_relu_pallas(x_nhwc, w_g, b_g, *, kh, kw, stride, G, scale=None,
                       tm_target=_CONV_TM):
    """relu( (scale*x) conv W + b ).  x_nhwc: (N,H,W,Cin) f32 -> (N,Ho,Wo,Cout)."""
    N, H, W, Cin = x_nhwc.shape
    GK, GC = w_g.shape
    K, Cout = GK // G, GC // G
    Ho = (H - kh) // stride + 1
    Wo = (W - kw) // stride + 1

    if scale is not None:
        # Fold the obs/255 prescale into the tiny weight once per call;
        # bias is NOT scaled:  relu((s*x) @ W + b) == relu(x @ (s*W) + b).
        w_g = w_g * scale

    # im2col (layout glue): inner order (kh, kw, cin).
    cols = []
    for i in range(kh):
        for j in range(kw):
            cols.append(x_nhwc[:, i:i + stride * Ho:stride, j:j + stride * Wo:stride, :])
    M = N * Ho * Wo
    patches = jnp.stack(cols, axis=3).reshape(M, K)

    # Adaptive row tile: ~tm_target rows/step, rounded so the grouped output
    # tile keeps sublane alignment (tm % (8*G) == 0) while minimizing zero pad.
    steps = max(1, pl.cdiv(M, tm_target))
    tm = _round_up(pl.cdiv(M, steps), 8 * G)
    M_pad = steps * tm
    patches = jnp.pad(patches, ((0, M_pad - M), (0, 0)))
    # Group G consecutive rows: pure row-major reinterpret, no data movement.
    patches_g = patches.reshape(M_pad // G, G * K)

    tmg = tm // G
    out = pl.pallas_call(
        _conv_gemm_kernel,
        out_shape=jax.ShapeDtypeStruct((M_pad // G, G * Cout), jnp.float32),
        grid_spec=pltpu.PrefetchScalarGridSpec(
            num_scalar_prefetch=0,
            grid=(steps,),
            in_specs=[
                pl.BlockSpec((tmg, G * K), lambda i: (i, 0)),       # grouped patches tile
                pl.BlockSpec((G * K, G * Cout), lambda i: (0, 0)),  # block-diag weight
                pl.BlockSpec((1, G * Cout), lambda i: (0, 0)),      # tiled bias
            ],
            out_specs=pl.BlockSpec((tmg, G * Cout), lambda i: (i, 0)),  # 128-lane dense
        ),
        compiler_params=pltpu.CompilerParams(dimension_semantics=("parallel",)),
    )(patches_g, w_g, b_g)
    # (M_pad//G, G*Cout) row-major contents == (M_pad, Cout) row-major.
    return out.reshape(M_pad, Cout)[:M].reshape(N, Ho, Wo, Cout)


# ---------------------------------------------------------------------------
# Kernel 2: fused projector  (Linear -> LayerNorm -> tanh)
# ---------------------------------------------------------------------------
def _projector_kernel(h_ref, w_ref, b_ref, g_ref, beta_ref, o_ref, acc_ref,
                      *, apply_tanh):
    k = pl.program_id(0)

    @pl.when(k == 0)
    def _init():
        acc_ref[...] = jnp.zeros_like(acc_ref)

    acc_ref[...] += jnp.dot(h_ref[...], w_ref[...],
                            preferred_element_type=jnp.float32)

    @pl.when(k == pl.num_programs(0) - 1)
    def _finalize():
        y = acc_ref[...] + b_ref[...]
        mean = jnp.mean(y, axis=-1, keepdims=True)
        var = jnp.mean((y - mean) ** 2, axis=-1, keepdims=True)  # biased, like nn.LayerNorm
        yn = (y - mean) * jax.lax.rsqrt(var + 1e-5)
        yn = yn * g_ref[...] + beta_ref[...]
        o_ref[...] = jnp.tanh(yn) if apply_tanh else yn


def projector_pallas(h, w_padded, b, gamma, beta, *, apply_tanh, tk):
    """h: (N, K) f32; w_padded: (K_pad, F) pre-padded so K_pad % tk == 0."""
    N, K = h.shape
    K_pad, F = w_padded.shape
    assert K_pad % tk == 0
    h_p = jnp.pad(h, ((0, 0), (0, K_pad - K)))

    return pl.pallas_call(
        functools.partial(_projector_kernel, apply_tanh=apply_tanh),
        out_shape=jax.ShapeDtypeStruct((N, F), jnp.float32),
        grid_spec=pltpu.PrefetchScalarGridSpec(
            num_scalar_prefetch=0,
            grid=(K_pad // tk,),
            in_specs=[
                pl.BlockSpec((N, tk), lambda k: (0, k)),
                pl.BlockSpec((tk, F), lambda k: (k, 0)),
                pl.BlockSpec((1, F), lambda k: (0, 0)),
                pl.BlockSpec((1, F), lambda k: (0, 0)),
                pl.BlockSpec((1, F), lambda k: (0, 0)),
            ],
            out_specs=pl.BlockSpec((N, F), lambda k: (0, 0)),
            scratch_shapes=[pltpu.VMEM((N, F), jnp.float32)],
        ),
        compiler_params=pltpu.CompilerParams(dimension_semantics=("arbitrary",)),
    )(h_p, w_padded, b.reshape(1, F), gamma.reshape(1, F), beta.reshape(1, F))


# ---------------------------------------------------------------------------
# PixelEncoder
# ---------------------------------------------------------------------------
class PixelEncoderPallas:
    def __init__(self, obs_shape, feature_dim, num_layers=2, num_filters=32,
                 output_logits=False, key=None):
        assert len(obs_shape) == 3
        self.feature_dim = feature_dim
        self.num_layers = num_layers
        self.num_filters = num_filters
        self.output_logits = output_logits

        if obs_shape[-1] == 108:
            assert num_layers in OUT_DIM_108
            out_dim = OUT_DIM_108[num_layers]
        elif obs_shape[-1] == 64:
            out_dim = OUT_DIM_64[num_layers]
        else:
            out_dim = OUT_DIM[num_layers]
        self.out_dim = out_dim

        key = jax.random.PRNGKey(0) if key is None else key
        ks = jax.random.split(key, 2 * num_layers + 2)

        # Row-group factor so conv GEMM output tiles are 128 lanes wide.
        G = 128 // num_filters if (num_filters <= 128 and 128 % num_filters == 0) else 1
        G = max(1, min(G, _CONV_TM // 8))
        self.conv_group = G

        # Deterministic synthetic init (matches PyTorch default shapes/bounds).
        self.conv_w, self.conv_b = [], []
        self.conv_wg, self.conv_bg = [], []        # pre-built GEMM forms (one-time)
        c_in = obs_shape[0]
        for i in range(num_layers):
            bound = 1.0 / np.sqrt(c_in * 9)
            w = jax.random.uniform(ks[2 * i], (num_filters, c_in, 3, 3),
                                   jnp.float32, -bound, bound)
            b = jax.random.uniform(ks[2 * i + 1], (num_filters,),
                                   jnp.float32, -bound, bound)
            self.conv_w.append(w)
            self.conv_b.append(b)
            wg, bg = _prep_conv_weights(w, b, G)
            self.conv_wg.append(wg)
            self.conv_bg.append(bg)
            c_in = num_filters

        fc_in = num_filters * out_dim * out_dim
        bound = 1.0 / np.sqrt(fc_in)
        self.fc_w = jax.random.uniform(ks[-2], (fc_in, feature_dim),
                                       jnp.float32, -bound, bound)
        self.fc_b = jax.random.uniform(ks[-1], (feature_dim,),
                                       jnp.float32, -bound, bound)
        self.ln_g = jnp.ones((feature_dim,), jnp.float32)
        self.ln_b = jnp.zeros((feature_dim,), jnp.float32)

        # Pre-permute fc_w rows from PyTorch's CHW flatten to the HWC (NHWC)
        # flatten used by the Pallas path, so no runtime activation transpose
        # is needed; also pre-pad K once so no per-call weight pad op.
        fc_w_hwc = (self.fc_w
                    .reshape(num_filters, out_dim, out_dim, feature_dim)
                    .transpose(1, 2, 0, 3)
                    .reshape(fc_in, feature_dim))

        # Projector K tile: cap so the double-buffered (tk, F) weight tile stays
        # within budget on every generation, then equalize tiles over the grid
        # steps (rounded to 128 lanes) to minimize zero-padded weight traffic.
        k_lane = _round_up(fc_in, 128)
        tk_cap = max(128, min(_PROJ_TK,
                              (_PROJ_VMEM_BUDGET // (8 * max(feature_dim, 1)))
                              // 128 * 128))
        steps = pl.cdiv(k_lane, tk_cap)
        self.proj_tk = _round_up(pl.cdiv(k_lane, steps), 128)
        k_pad = steps * self.proj_tk
        self.fc_w_hwc = jnp.pad(fc_w_hwc, ((0, k_pad - fc_in), (0, 0)))

    def __call__(self, obs_nchw):
        # TODO(synk): detach / detach_mlp and the self.outputs logging dict are
        # training/diagnostic-only (autograd + histograms) and have no effect
        # on the forward values; omitted.
        obs_nchw = obs_nchw.astype(jnp.float32)
        scale = jnp.where(jnp.max(obs_nchw) > 1.0, 1.0 / 255.0, 1.0)
        x = jnp.transpose(obs_nchw, (0, 2, 3, 1))  # NCHW -> NHWC (layout glue)

        G = self.conv_group
        x = conv2d_relu_pallas(x, self.conv_wg[0], self.conv_bg[0],
                               kh=3, kw=3, stride=2, G=G, scale=scale)
        for i in range(1, self.num_layers):
            # TODO(synk): stride-1 layers still build the im2col patch matrix in
            # the wrapper (HBM); a fully in-VMEM fused conv needs rank>2 dots or
            # in-kernel minor-dim reshapes and was left out to keep lowering safe.
            x = conv2d_relu_pallas(x, self.conv_wg[i], self.conv_bg[i],
                                   kh=3, kw=3, stride=1, G=G, scale=None)

        # NHWC flatten (fc_w rows were pre-permuted to match) -> no transpose.
        n = x.shape[0]
        h = x.reshape(n, -1)

        return projector_pallas(h, self.fc_w_hwc, self.fc_b, self.ln_g, self.ln_b,
                                apply_tanh=not self.output_logits, tk=self.proj_tk)


# ---------------------------------------------------------------------------
# Pure-JAX reference (for a sanity check of the Pallas path)
# ---------------------------------------------------------------------------
def reference_forward(enc, obs_nchw):
    obs_nchw = obs_nchw.astype(jnp.float32)
    scale = jnp.where(jnp.max(obs_nchw) > 1.0, 1.0 / 255.0, 1.0)
    x = obs_nchw * scale
    for i in range(enc.num_layers):
        stride = 2 if i == 0 else 1
        x = jax.lax.conv_general_dilated(
            x, enc.conv_w[i], (stride, stride), 'VALID',
            dimension_numbers=('NCHW', 'OIHW', 'NCHW'))
        x = jnp.maximum(x + enc.conv_b[i][None, :, None, None], 0.0)
    h = x.reshape(x.shape[0], -1)            # PyTorch CHW flatten
    y = h @ enc.fc_w + enc.fc_b
    mean = y.mean(-1, keepdims=True)
    var = ((y - mean) ** 2).mean(-1, keepdims=True)
    yn = (y - mean) / jnp.sqrt(var + 1e-5)
    yn = yn * enc.ln_g + enc.ln_b
    return yn if enc.output_logits else jnp.tanh(yn)


if __name__ == "__main__":
    key = jax.random.PRNGKey(0)
    k_obs, k_params = jax.random.split(key)

    # obs_shape = (3, 64, 64) -> out_dim = OUT_DIM_64[2] = 29
    obs_shape = (3, 64, 64)
    batch = 2
    feature_dim = 50
    obs = jax.random.uniform(k_obs, (batch,) + obs_shape,
                             jnp.float32, 0.0, 255.0)  # exercises the /255 branch

    enc = PixelEncoderPallas(obs_shape, feature_dim, num_layers=2,
                             num_filters=32, key=k_params)

    out = enc(obs)
    out = jax.block_until_ready(out)

    ref = jax.block_until_ready(reference_forward(enc, obs))
    assert out.shape == (batch, feature_dim)
    assert bool(jnp.all(jnp.isfinite(out)))
    max_err = float(jnp.max(jnp.abs(out - ref)))
    assert max_err < 5e-2, f"mismatch vs reference: {max_err}"

    print("KERNEL_OK")
</pallas_src>

<mosaic_0001>
module attributes {stable_mosaic.version = 11 : i64} {
  func.func @_conv_gemm_kernel(%arg0: i32, %arg1: memref<128x108xf32, #tpu.memory_space<vmem>>, %arg2: memref<108x128xf32, #tpu.memory_space<vmem>>, %arg3: memref<1x128xf32, #tpu.memory_space<vmem>>, %arg4: memref<128x128xf32, #tpu.memory_space<vmem>>) attributes {dimension_semantics = [#tpu.dimension_semantics<parallel>], iteration_bounds = array<i64: 4>, scalar_prefetch = 0 : i64, scratch_operands = 0 : i64, tpu.core_type = #tpu.core_type<tc>, window_params = [{transform_indices = @transform_0, window_bounds = array<i64: 128, 108>}, {pipeline_mode = #tpu.pipeline_mode<synchronous>, transform_indices = @transform_1, window_bounds = array<i64: 108, 128>}, {pipeline_mode = #tpu.pipeline_mode<synchronous>, transform_indices = @transform_2, window_bounds = array<i64: 1, 128>}, {transform_indices = @transform_3, window_bounds = array<i64: 128, 128>}]} {
    %c0 = arith.constant 0 : index
    %c0_0 = arith.constant 0 : index
    %0 = vector.load %arg1[%c0, %c0_0] : memref<128x108xf32, #tpu.memory_space<vmem>>, vector<128x108xf32>
    %c0_1 = arith.constant 0 : index
    %c0_2 = arith.constant 0 : index
    %1 = vector.load %arg2[%c0_1, %c0_2] : memref<108x128xf32, #tpu.memory_space<vmem>>, vector<108x128xf32>
    %cst = arith.constant dense<0.000000e+00> : vector<128x128xf32>
    %2 = tpu.matmul %0, %1, %cst {dimension_numbers = #tpu.dot_dimension_numbers<[1], [0], [0], [1], [0, 0, 1, 1], [], []>} : vector<128x108xf32>, vector<108x128xf32>, vector<128x128xf32> -> vector<128x128xf32>
    %c0_3 = arith.constant 0 : index
    %c0_4 = arith.constant 0 : index
    %3 = vector.load %arg3[%c0_3, %c0_4] : memref<1x128xf32, #tpu.memory_space<vmem>>, vector<1x128xf32>
    %4 = vector.broadcast %3 : vector<1x128xf32> to vector<128x128xf32>
    %5 = arith.addf %2, %4 : vector<128x128xf32>
    %cst_5 = arith.constant 0.000000e+00 : f32
    %6 = vector.broadcast %cst_5 : f32 to vector<128x128xf32>
    %7 = arith.maximumf %5, %6 : vector<128x128xf32>
    %c0_6 = arith.constant 0 : index
    %c0_7 = arith.constant 0 : index
    %8 = vector.load %arg4[%c0_6, %c0_7] : memref<128x128xf32, #tpu.memory_space<vmem>>, vector<128x128xf32>
    tpu.vector_store %arg4[%c0_6, %c0_7], %7 {strides = array<i32>} : memref<128x128xf32, #tpu.memory_space<vmem>>, vector<128x128xf32>,
    return
  }
  func.func @transform_0(%arg0: i32) -> (i32, i32) {
    %c0_i32 = arith.constant 0 : i32
    %c0_i32_0 = arith.constant 0 : i32
    return %arg0, %c0_i32 : i32, i32
  }
  func.func @transform_1(%arg0: i32) -> (i32, i32) {
    %c0_i32 = arith.constant 0 : i32
    %c0_i32_0 = arith.constant 0 : i32
    %c0_i32_1 = arith.constant 0 : i32
    return %c0_i32, %c0_i32_0 : i32, i32
  }
  func.func @transform_2(%arg0: i32) -> (i32, i32) {
    %c0_i32 = arith.constant 0 : i32
    %c0_i32_0 = arith.constant 0 : i32
    %c0_i32_1 = arith.constant 0 : i32
    return %c0_i32, %c0_i32_0 : i32, i32
  }
  func.func @transform_3(%arg0: i32) -> (i32, i32) {
    %c0_i32 = arith.constant 0 : i32
    %c0_i32_0 = arith.constant 0 : i32
    return %arg0, %c0_i32 : i32, i32
  }
}

</mosaic_0001>

<bundles_post_ra>
// kernel: tpu_custom_call.1
= control target key start
LH: loop header
LB: loop body
LE: loop exit
PB: predicated region body
PF: predicated region fallthrough
CT: control target
= control target key end

     0   :  { %8 = vsyncpa [#allocation3], 0  ;;  %s838_s0 = inlined_call_operand.vmem [shape: f32[512,108], index: 0, kind: input, shape index: {}]   ;;  %s839_s1 = inlined_call_operand.vmem [shape: f32[108,128], index: 1, kind: input, shape index: {}]   ;;  %s840_s2 = inlined_call_operand.vmem [shape: f32[1,128], index: 2, kind: input, shape index: {}]   ;;  %s841_s3 = inlined_call_operand.hbm [shape: f32[512,128], index: 3, kind: output, shape index: {}]  }
   0x1   :  { %10 = vsyncpa [#allocation3 + $0x1], 0  ;;  %s634_s12 = smov 0   ;;  %s636_s13 = smov 0  }
   0x2   :  { %s638_s14 = smov 0   ;;  %s640_s15 = smov 0  }
   0x3 LB: > { %s655_s16 = sadd.s32 4294967295, %s610_s15   ;;  %s434_s17 = sadd.s32 4294967294, %s610_s15   ;;  %s610_s15 = sphi %s640_s15, %s847_s15   ;;  %s606_s14 = sphi %s638_s14, %s846_s14   ;;  %s602_s13 = sphi %s636_s13, %s845_s13   ;;  %s598_s12 = sphi %s634_s12, %s844_s12  }
   0x4   : > { %s659_s18 = sadd.s32 1, %s610_s15   ;;  %s91_s19 = sadd.s32 1, %s606_s14 }
   0x5   : > { %s88_s20 = ssub.s32 %s610_s15, %s659_s18  ;;  %p101_p0 = scmp.ne.s32.totalorder %s606_s14, %s602_s13 }
   0x6   : > { %p89_p1 = scmp.eq.s32.totalorder %s88_s20, 0  ;;  %p102_p2 = scmp.eq.s32.totalorder %s655_s16, 3 }
   0x7   : > { %p107_p3 = scmp.ne.s32.totalorder %s602_s13, %s598_s12  ;;  %p108_p4 = scmp.eq.s32.totalorder %s434_s17, 3 }
   0x8   : > { %s670_s21 = scalar_select %p89_p1, %s606_s14, %s91_s19  }
   0x9   : > { %p672_p5 = por %p102_p2, %p101_p0  ;;  %p676_p6 = por %p108_p4, %p107_p3 }
   0xa   : > { %p437_p7 = scmp.ge.s32.totalorder %s610_s15, 1  ;;  %p141_p8 = scmp.lt.s32.totalorder %s610_s15, 5 }
   0xc   : > { %p142_p9 = pnand %p437_p7, %p141_p8 }
   0xd   : > { %s439_s9 = sshll.u32 (!%p142_p9), %s655_s16, 4  ;;  %s162_s17 = sand.u32 (!%p142_p9), 1, %s602_s13  }
   0xe   : > { %145 = sbr.rel (%p142_p9) target bundleno = 212 (0xd4), region = 32  ;;  %p166_p10 = scmp.lt.s32.totalorder (!%p142_p9), %s439_s9, 63 }
   0xf   : > { %s438_s24 = sshll.u32 (!%p142_p9), %s162_s17, 7  ;;  %s463_s26 = sshll.u32 (!%p142_p9), %s655_s16, 7 }
  0x10   : > { %s772_s25 = scalar_lea.vmem (!%p142_p9), [#allocation2], %s438_s24  ;;  %s357_s4 = scalar_lea.sflag (!%p142_p9), [#allocation3], %s162_s17 }
  0x11   : > { %s369_s16 = sshll.u32 (!%p142_p9), %s772_s25, 4  ;;  %s370_s16 = int_to_ptr.vmem [resolvable:$true] %s369_s16 }
  0x13   : > { %v201_v0 = vld [vmem:[%s839_s1 + $0x68] sm:$0xf]  ;;  %vm255_vm0 = vcmask 1043456   ;;  %v200_v1 = vld [vmem:[%s839_s1 + $0x60] sm:$0xff]  ;;  %v199_v2 = vld [vmem:[%s839_s1 + $0x58] sm:$0xff]  ;;  %s849_s9 = smov (!%p166_p10, %s439_s9), 63 }
  0x14   : > { %465 = vmatpush.msk.msra.mxu2 %vm255_vm0, %v201_v0  ;;  %466 = vmatpush.msk.msra.mxu3 %vm255_vm0, %v201_v0  ;;  %v198_v3 = vld [vmem:[%s839_s1 + $0x50] sm:$0xff]  ;;  %v197_v4 = vld [vmem:[%s839_s1 + $0x48] sm:$0xff]  ;;  %v196_v5 = vld [vmem:[%s839_s1 + $0x40] sm:$0xff]  ;;  %s440_s29 = sshll.u32 %s849_s9, 3  ;;  %vm206_vm1 = vcmask 883712  }
  0x15   : > { %441 = vmatpush.msk.msra.mxu0 %vm255_vm0, %v201_v0  ;;  %464 = vmatpush.msk.msra.mxu1 %vm255_vm0, %v201_v0  ;;  %v195_v6 = vld [vmem:[%s839_s1 + $0x38] sm:$0xff]  ;;  %v194_v7 = vld [vmem:[%s839_s1 + $0x30] sm:$0xff]  ;;  %v193_v8 = vld [vmem:[%s839_s1 + $0x28] sm:$0xff]  ;;  %s725_s10 = scalar_lea.vmem %s838_s0, %s440_s29  ;;  %s368_s29 = scalar_lea.hbm %s841_s3, %s463_s26 }
  0x16   : > { %468 = vmatpush.msra.mxu2 %v200_v1  ;;  %469 = vmatpush.msra.mxu3 %v200_v1  ;;  %v192_v9 = vld [vmem:[%s839_s1 + $0x20] sm:$0xff]  ;;  %v191_v10 = vld [vmem:[%s839_s1 + $0x18] sm:$0xff]  ;;  %v190_v11 = vld [vmem:[%s839_s1 + $0x10] sm:$0xff]  ;;  %s371_s30 = sshll.u32 %s368_s29, 4  ;;  %s372_s30 = int_to_ptr.hbm [resolvable:$true] %s371_s30 }
  0x17   : > { %262 = vmatpush.msra.mxu0 %v200_v1  ;;  %467 = vmatpush.msra.mxu1 %v200_v1  ;;  %v189_v12 = vld [vmem:[%s839_s1 + $0x8] sm:$0xff]  ;;  %v188_v13 = vld [vmem:[%s839_s1] sm:$0xff]  ;;  %v182_v22 = vld [vmem:[%s725_s10 + $0x50] sm:$0xff]  ;;  %s562_s5 = sshra.s32 %s372_s30, 4  ;;  %s563_s5 = int_to_ptr.hbm [resolvable:$true] %s562_s5 }
  0x18   : > { %471 = vmatpush.msra.mxu2 %v199_v2  ;;  %472 = vmatpush.msra.mxu3 %v199_v2  ;;  %v180_v14 = vld [vmem:[%s725_s10 + $0x40] sm:$0xff]  ;;  %v181_v18 = vld [vmem:[%s725_s10 + $0x48] sm:$0xff]  ;;  %v186_v23 = vld [vmem:[%s725_s10 + $0x70] sm:$0xff]  ;;  %s564_s6 = scalar_lea.hbm %s563_s5, 128  ;;  %p569_p0 = scmp.lt.s32.totalorder %s563_s5, %s841_s3 }
  0x19   : > { %263 = vmatpush.msra.mxu0 %v199_v2  ;;  %470 = vmatpush.msra.mxu1 %v199_v2  ;;  %v184_v15 = vld [vmem:[%s725_s10 + $0x60] sm:$0xff]  ;;  %v185_v19 = vld [vmem:[%s725_s10 + $0x68] sm:$0xff]  ;;  %v174_v24 = vld [vmem:[%s725_s10 + $0x10] sm:$0xff]  ;;  %p565_p11 = scmp.ne.s32.totalorder %s563_s5, %s564_s6 }
  0x1a   : > { %474 = vmatpush.msra.mxu2 %v198_v3  ;;  %475 = vmatpush.msra.mxu3 %v198_v3  ;;  %v172_v16 = vld [vmem:[%s725_s10] sm:$0xff]  ;;  %v173_v20 = vld [vmem:[%s725_s10 + $0x8] sm:$0xff]  ;;  %v178_v25 = vld [vmem:[%s725_s10 + $0x30] sm:$0xff] }
  0x1b   : > { %264 = vmatpush.msra.mxu0 %v198_v3  ;;  %473 = vmatpush.msra.mxu1 %v198_v3  ;;  %v176_v17 = vld [vmem:[%s725_s10 + $0x20] sm:$0xff]  ;;  %v177_v21 = vld [vmem:[%s725_s10 + $0x28] sm:$0xff]  ;;  %v183_v26 = vld [vmem:[%s725_s10 + $0x58] sm:$0xff]  ;;  %p566_p12 = pnand %p565_p11, %p672_p5 }
  0x1c   : > { %477 = vmatpush.msra.mxu2 %v197_v4  ;;  %478 = vmatpush.msra.mxu3 %v197_v4  ;;  %v187_v27 = vld [vmem:[%s725_s10 + $0x78] sm:$0xff]  ;;  %v766_v30 = vld [vmem:[%s840_s2] ss:$0 sm:$0xff] }
  0x1d   : > { %265 = vmatpush.msra.mxu0 %v197_v4  ;;  %476 = vmatpush.msra.mxu1 %v197_v4  ;;  %v175_v28 = vld [vmem:[%s725_s10 + $0x18] sm:$0xff]  ;;  %p567_p13 = pneg %p566_p12 }
  0x1e   : > { %480 = vmatpush.msra.mxu2 %v196_v5  ;;  %481 = vmatpush.msra.mxu3 %v196_v5  ;;  %v179_v29 = vld [vmem:[%s725_s10 + $0x38] sm:$0xff]  ;;  %s568_s10 = scalar_lea.hbm %s841_s3, 512 }
  0x1f   : > { %266 = vmatpush.msra.mxu0 %v196_v5  ;;  %479 = vmatpush.msra.mxu1 %v196_v5  ;;  %p570_p1 = scmp.lt.s32.totalorder %s568_s10, %s564_s6 }
  0x20   : > { %483 = vmatpush.msra.mxu2 %v195_v6  ;;  %484 = vmatpush.msra.mxu3 %v195_v6 }
  0x21   : > { %267 = vmatpush.msra.mxu0 %v195_v6  ;;  %482 = vmatpush.msra.mxu1 %v195_v6  ;;  %p571_p2 = por %p570_p1, %p569_p0 }
  0x22   : > { %486 = vmatpush.msra.mxu2 %v194_v7  ;;  %487 = vmatpush.msra.mxu3 %v194_v7 }
  0x23   : > { %268 = vmatpush.msra.mxu0 %v194_v7  ;;  %485 = vmatpush.msra.mxu1 %v194_v7  ;;  %p572_p3 = pnand %p571_p2, %p567_p13 }
  0x24   : > { %489 = vmatpush.msra.mxu2 %v193_v8  ;;  %490 = vmatpush.msra.mxu3 %v193_v8 }
  0x25   : > { %269 = vmatpush.msra.mxu0 %v193_v8  ;;  %488 = vmatpush.msra.mxu1 %v193_v8 }
  0x26   : > { %492 = vmatpush.msra.mxu2 %v192_v9  ;;  %493 = vmatpush.msra.mxu3 %v192_v9 }
  0x27   : > { %270 = vmatpush.msra.mxu0 %v192_v9  ;;  %491 = vmatpush.msra.mxu1 %v192_v9 }
  0x28   : > { %495 = vmatpush.msra.mxu2 %v191_v10  ;;  %496 = vmatpush.msra.mxu3 %v191_v10 }
  0x29   : > { %271 = vmatpush.msra.mxu0 %v191_v10  ;;  %494 = vmatpush.msra.mxu1 %v191_v10 }
  0x2a   : > { %498 = vmatpush.msra.mxu2 %v190_v11  ;;  %499 = vmatpush.msra.mxu3 %v190_v11 }
  0x2b   : > { %272 = vmatpush.msra.mxu0 %v190_v11  ;;  %497 = vmatpush.msra.mxu1 %v190_v11 }
  0x2c   : > { %501 = vmatpush.msra.mxu2 %v189_v12  ;;  %502 = vmatpush.msra.mxu3 %v189_v12 }
  0x2d   : > { %273 = vmatpush.msra.mxu0 %v189_v12  ;;  %500 = vmatpush.msra.mxu1 %v189_v12 }
  0x2e   : > { %504 = vmatpush.msra.mxu2 %v188_v13  ;;  %505 = vmatpush.msra.mxu3 %v188_v13 }
  0x2f   : > { %450 = vmatmul.msk.f32.vlgmr.msra.gmra.mxu2 %vm206_vm1, %v180_v14  ;;  %454 = vmatmul.msk.f32.vlgmr.msra.gmra.mxu3 %vm206_vm1, %v184_v15 }
  0x30   : > { %274 = vmatpush.msra.mxu0 %v188_v13  ;;  %503 = vmatpush.msra.mxu1 %v188_v13 }
  0x31   : > { %442 = vmatmul.msk.f32.vlgmr.msra.gmra.mxu0 %vm206_vm1, %v172_v16  ;;  %446 = vmatmul.msk.f32.vlgmr.msra.gmra.mxu1 %vm206_vm1, %v176_v17 }
  0x37   : > { %451 = vmatmul.msk.f32.gmra.mxu2 %vm206_vm1, %v181_v18  ;;  %455 = vmatmul.msk.f32.gmra.mxu3 %vm206_vm1, %v185_v19 }
  0x39   : > { %443 = vmatmul.msk.f32.gmra.mxu0 %vm206_vm1, %v173_v20  ;;  %447 = vmatmul.msk.f32.gmra.mxu1 %vm206_vm1, %v177_v21 }
  0x3f   : > { %452 = vmatmul.msk.f32.gmra.mxu2 %vm206_vm1, %v182_v22  ;;  %456 = vmatmul.msk.f32.gmra.mxu3 %vm206_vm1, %v186_v23 }
  0x41   : > { %444 = vmatmul.msk.f32.gmra.mxu0 %vm206_vm1, %v174_v24  ;;  %448 = vmatmul.msk.f32.gmra.mxu1 %vm206_vm1, %v178_v25 }
  0x47   : > { %453 = vmatmul.msk.f32.gmra.mxu2 %vm206_vm1, %v183_v26  ;;  %457 = vmatmul.msk.f32.gmra.mxu3 %vm206_vm1, %v187_v27 }
  0x49   : > { %445 = vmatmul.msk.f32.gmra.mxu0 %vm206_vm1, %v175_v28  ;;  %449 = vmatmul.msk.f32.gmra.mxu1 %vm206_vm1, %v179_v29 }
  0xae   : > { %v276_v31 = vpop.f32.mrf.mxu0  ;;  %v288_v32 = vpop.f32.mrf.mxu1 }
  0xaf   : > { %v277_v33 = vadd.f32 %v766_v30, %v276_v31  ;;  %v289_v34 = vadd.f32 %v766_v30, %v288_v32 }
  0xb1   : > { %v324_v35 = vmax.f32 %v277_v33, 0.0  ;;  %v328_v36 = vmax.f32 %v289_v34, 0.0 }
  0xb2   : > { %v300_v37 = vpop.f32.mrf.mxu2  ;;  %v312_v38 = vpop.f32.mrf.mxu3 }
  0xb3   : > { %340 = vst [vmem:[%s772_s25] sm:$0xff] %v324_v35  ;;  %v301_v39 = vadd.f32 %v766_v30, %v300_v37  ;;  %v313_v40 = vadd.f32 %v766_v30, %v312_v38 }
  0xb4   : > { %344 = vst [vmem:[%s772_s25 + $0x20] sm:$0xff] %v328_v36 }
  0xb5   : > { %v332_v41 = vmax.f32 %v301_v39, 0.0  ;;  %v336_v42 = vmax.f32 %v313_v40, 0.0 }
  0xb6   : > { %v279_v43 = vpop.f32.mrf.mxu0  ;;  %v291_v44 = vpop.f32.mrf.mxu1 }
  0xb7   : > { %348 = vst [vmem:[%s772_s25 + $0x40] sm:$0xff] %v332_v41  ;;  %v280_v45 = vadd.f32 %v766_v30, %v279_v43  ;;  %v292_v46 = vadd.f32 %v766_v30, %v291_v44 }
  0xb8   : > { %352 = vst [vmem:[%s772_s25 + $0x60] sm:$0xff] %v336_v42 }
  0xb9   : > { %v325_v47 = vmax.f32 %v280_v45, 0.0  ;;  %v329_v48 = vmax.f32 %v292_v46, 0.0 }
  0xba   : > { %v303_v49 = vpop.f32.mrf.mxu2  ;;  %v315_v50 = vpop.f32.mrf.mxu3 }
  0xbb   : > { %341 = vst [vmem:[%s772_s25 + $0x8] sm:$0xff] %v325_v47  ;;  %v304_v51 = vadd.f32 %v766_v30, %v303_v49  ;;  %v316_v52 = vadd.f32 %v766_v30, %v315_v50 }
  0xbc   : > { %345 = vst [vmem:[%s772_s25 + $0x28] sm:$0xff] %v329_v48 }
  0xbd   : > { %v333_v53 = vmax.f32 %v304_v51, 0.0  ;;  %v337_v54 = vmax.f32 %v316_v52, 0.0 }
  0xbe   : > { %v282_v55 = vpop.f32.mrf.mxu0  ;;  %v294_v56 = vpop.f32.mrf.mxu1 }
  0xbf   : > { %349 = vst [vmem:[%s772_s25 + $0x48] sm:$0xff] %v333_v53  ;;  %v283_v57 = vadd.f32 %v766_v30, %v282_v55  ;;  %v295_v58 = vadd.f32 %v766_v30, %v294_v56 }
  0xc0   : > { %353 = vst [vmem:[%s772_s25 + $0x68] sm:$0xff] %v337_v54 }
  0xc1   : > { %v326_v59 = vmax.f32 %v283_v57, 0.0  ;;  %v330_v60 = vmax.f32 %v295_v58, 0.0 }
  0xc2   : > { %v306_v61 = vpop.f32.mrf.mxu2  ;;  %v318_v62 = vpop.f32.mrf.mxu3 }
  0xc3   : > { %342 = vst [vmem:[%s772_s25 + $0x10] sm:$0xff] %v326_v59  ;;  %v307_v63 = vadd.f32 %v766_v30, %v306_v61  ;;  %v319_v0 = vadd.f32 %v766_v30, %v318_v62 }
  0xc4   : > { %346 = vst [vmem:[%s772_s25 + $0x30] sm:$0xff] %v330_v60 }
  0xc5   : > { %v334_v1 = vmax.f32 %v307_v63, 0.0  ;;  %v338_v2 = vmax.f32 %v319_v0, 0.0 }
  0xc6   : > { %v285_v3 = vpop.f32.mrf.mxu0  ;;  %v297_v4 = vpop.f32.mrf.mxu1 }
  0xc7   : > { %350 = vst [vmem:[%s772_s25 + $0x50] sm:$0xff] %v334_v1  ;;  %v286_v5 = vadd.f32 %v766_v30, %v285_v3  ;;  %v298_v6 = vadd.f32 %v766_v30, %v297_v4 }
  0xc8   : > { %354 = vst [vmem:[%s772_s25 + $0x70] sm:$0xff] %v338_v2 }
  0xc9   : > { %v327_v7 = vmax.f32 %v286_v5, 0.0  ;;  %v331_v8 = vmax.f32 %v298_v6, 0.0 }
  0xca   : > { %v309_v9 = vpop.f32.mrf.mxu2  ;;  %v321_v10 = vpop.f32.mrf.mxu3 }
  0xcb   : > { %343 = vst [vmem:[%s772_s25 + $0x18] sm:$0xff] %v327_v7  ;;  %v310_v11 = vadd.f32 %v766_v30, %v309_v9  ;;  %v322_v12 = vadd.f32 %v766_v30, %v321_v10 }
  0xcc   : > { %347 = vst [vmem:[%s772_s25 + $0x38] sm:$0xff] %v331_v8 }
  0xcd   : > { %v335_v13 = vmax.f32 %v310_v11, 0.0  ;;  %v339_v14 = vmax.f32 %v322_v12, 0.0 }
  0xcf   : > { %351 = vst [vmem:[%s772_s25 + $0x58] sm:$0xff] %v335_v13 }
  0xd0   : > { %355 = vst [vmem:[%s772_s25 + $0x78] sm:$0xff] %v339_v14 }
  0xd1   : > { %575 = shalt.err (!%p572_p3)
}
  0xd2   : > { %s612_s17 = smov 128   ;;  %s613_s19 = smov 8  }
  0xd3   : > { %506 = dma.vmem_to_hbm [thread:$0]  (%p672_p5), %s370_s16, 2048, %s372_s30, %s357_s4, %s612_s17, %s612_s17, %s613_s19  }
  0xd4 PF: > { %p512_p4 = scmp.ge.s32.totalorder %s610_s15, 2  ;;  %s386_s20 = sand.u32 1, %s598_s12  }
  0xd5   : > { %s387_s24 = scalar_lea.sflag [#allocation3], %s386_s20 }
  0xd6   : > { %p509_p7 = pnand %p512_p4, %p676_p6 }
  0xd8   : > { %p510_p8 = pneg %p509_p7 }
  0xda   : > { %593 = dma.done.wait (%p510_p8), %s387_s24, 2048  }
  0xdb   : > { %595 = vsyncadd (%p510_p8), %s387_s24, 4294965248  ;;  %p13_p9 = scmp.ge.s32.totalorder %s659_s18, 6   ;;  %s844_s12 = smov %s602_s13 }
  0xdc   : > { %s845_s13 = smov %s606_s14  ;;  %s846_s14 = smov %s670_s21 }
  0xdd   : > { %s847_s15 = smov %s659_s18  ;;  %15 = sbr.rel (!%p13_p9) target bundleno = 3 (0x3), region = 67 }
  0xe2   :  { %393 = vsyncpa [#allocation3], 1 }
  0xe3   :  { %395 = vsyncpa [#allocation3 + $0x1], 1 }

</bundles_post_ra>
